<compile_context>
chip_gen: v5e
topology: v5e:2x2
jax: 0.10.0
libtpu: 0.0.40
codegen_flags: <defaults>
</compile_context>

<pallas_src>
import functools

import jax
import jax.numpy as jnp
from jax.experimental import pallas as pl
from jax.experimental.pallas import tpu as pltpu

_LANE = 128
_SUBLANE = 8


def _round_up(n, m):
    return (n + m - 1) // m * m


def _autoencoder_kernel(x_ref, w_ref, b_ref, o_ref, *, n_layers):
    """Fused MLP forward on one batch tile.

    x_ref : (TM, D)   f32  batch tile (feature dim zero-padded to D)
    w_ref : (L, D, D) bf16 stacked, zero-padded layer weights ([in, out] layout)
    b_ref : (L, D)    f32  stacked, zero-padded layer biases
    o_ref : (TM, D)   f32
    """
    h = x_ref[...]                                    # f32 activations, lane-dense
    for l in range(n_layers):                         # static unroll (8 layers)
        # MXU matmul: bf16 operands, f32 accumulation.
        h = jnp.dot(h.astype(w_ref.dtype), w_ref[l],
                    preferred_element_type=jnp.float32)
        h = h + b_ref[pl.ds(l, 1), :]                 # (1, D) broadcast, f32
        if l + 1 < n_layers:
            h = jnp.maximum(h, 0.0)                   # ReLU (VPU)
        else:
            h = jax.nn.sigmoid(h)                     # final Sigmoid (EUP)
    o_ref[...] = h.astype(o_ref.dtype)                # unmasked lane-dense store


def autoencoder_forward(x, params, *, block_m=512):
    """x: [B, input_dim] float32. params: list of 8 (W[in,out] f32, b[1,out] f32).

    Intended for small MLP widths (<= a few hundred); all layer widths are
    padded to one uniform lane multiple D = round_up(max width, 128).
    """
    B, input_dim = x.shape
    n_layers = len(params)

    # --- uniform lane-dense width for every layer -------------------------
    dims = [input_dim] + [w.shape[1] for (w, _) in params]
    D = _round_up(max(dims), _LANE)

    # --- input: pad feature dim to D, batch to a multiple of the tile -----
    x_p = x.astype(jnp.float32)
    if D != input_dim:
        x_p = jnp.pad(x_p, ((0, 0), (0, D - input_dim)))
    tm = min(block_m, _round_up(B, _SUBLANE))
    b_pad = _round_up(B, tm)
    if b_pad != B:
        x_p = jnp.pad(x_p, ((0, b_pad - B), (0, 0)))
    grid = (b_pad // tm,)

    # --- stack all layer params into (L, D, D) bf16 + (L, D) f32 ----------
    w_stack = jnp.zeros((n_layers, D, D), jnp.bfloat16)
    b_stack = jnp.zeros((n_layers, D), jnp.float32)
    for li, (w, b) in enumerate(params):
        w_stack = w_stack.at[li, :w.shape[0], :w.shape[1]].set(
            w.astype(jnp.bfloat16))
        b_stack = b_stack.at[li, :b.shape[-1]].set(
            b.reshape(-1).astype(jnp.float32))

    # --- BlockSpecs --------------------------------------------------------
    x_spec = pl.BlockSpec((tm, D), lambda i: (i, 0))
    out_spec = pl.BlockSpec((tm, D), lambda i: (i, 0))
    # params: full-array blocks, constant index map -> VMEM-resident across steps
    w_spec = pl.BlockSpec((n_layers, D, D), lambda i: (0, 0, 0))
    b_spec = pl.BlockSpec((n_layers, D), lambda i: (0, 0))

    # --- cost estimate (advisory, padded-shape arithmetic) -----------------
    flops = int(2 * b_pad * D * D * n_layers)
    bytes_accessed = int(
        x_p.size * x_p.dtype.itemsize
        + b_pad * D * 4                                    # output
        + w_stack.size * w_stack.dtype.itemsize
        + b_stack.size * b_stack.dtype.itemsize)
    transcendentals = int(b_pad * D)                       # final sigmoid

    kernel = functools.partial(_autoencoder_kernel, n_layers=n_layers)

    out_padded = pl.pallas_call(
        kernel,
        out_shape=jax.ShapeDtypeStruct((b_pad, D), jnp.float32),
        grid=grid,
        in_specs=[x_spec, w_spec, b_spec],
        out_specs=out_spec,
        compiler_params=pltpu.CompilerParams(
            dimension_semantics=("parallel",)),
        cost_estimate=pl.CostEstimate(
            flops=flops,
            transcendentals=transcendentals,
            bytes_accessed=bytes_accessed),
    )(x_p, w_stack, b_stack)

    return out_padded[:B, :input_dim]


def init_params(key, input_dim, hidden_dim1, hidden_dim2, hidden_dim3, latent_dim):
    """Deterministic init mimicking nn.Linear's uniform(-1/sqrt(fan_in), 1/sqrt(fan_in))."""
    dims = [
        # encoder
        (input_dim, hidden_dim1), (hidden_dim1, hidden_dim2),
        (hidden_dim2, hidden_dim3), (hidden_dim3, latent_dim),
        # decoder
        (latent_dim, hidden_dim3), (hidden_dim3, hidden_dim2),
        (hidden_dim2, hidden_dim1), (hidden_dim1, input_dim),
    ]
    params = []
    for (fan_in, fan_out) in dims:
        key, kw, kb = jax.random.split(key, 3)
        bound = 1.0 / jnp.sqrt(fan_in)
        # stored as [in, out] (transposed relative to PyTorch's [out, in])
        w = jax.random.uniform(kw, (fan_in, fan_out), jnp.float32, -bound, bound)
        b = jax.random.uniform(kb, (1, fan_out), jnp.float32, -bound, bound)
        params.append((w, b))
    return params


if __name__ == "__main__":
    # small shapes consistent with the module's forward
    B = 8
    input_dim, h1, h2, h3, latent = 64, 32, 16, 16, 8

    key = jax.random.PRNGKey(0)
    key, kx = jax.random.split(key)
    x = jax.random.normal(kx, (B, input_dim), dtype=jnp.float32)

    params = init_params(key, input_dim, h1, h2, h3, latent)

    fwd = jax.jit(functools.partial(autoencoder_forward, params=params))
    out = fwd(x)
    out = jax.block_until_ready(out)

    # reference check in plain JAX (f32 weights; kernel uses bf16 weights with
    # f32 accumulation, so tolerance is loosened accordingly)
    ref = x
    for i, (w, b) in enumerate(params):
        ref = ref @ w + b
        ref = jax.nn.sigmoid(ref) if i == len(params) - 1 else jnp.maximum(ref, 0.0)
    assert out.shape == (B, input_dim)
    assert jnp.allclose(out, ref, atol=2e-2, rtol=2e-2), (
        float(jnp.max(jnp.abs(out - ref))))

    print("KERNEL_OK")
</pallas_src>

<mosaic_0001>
module attributes {stable_mosaic.version = 11 : i64} {
  func.func @_autoencoder_kernel(%arg0: i32, %arg1: memref<8x128xf32, #tpu.memory_space<vmem>>, %arg2: memref<8x128x128xbf16, #tpu.memory_space<vmem>>, %arg3: memref<8x128xf32, #tpu.memory_space<vmem>>, %arg4: memref<8x128xf32, #tpu.memory_space<vmem>>) attributes {dimension_semantics = [#tpu.dimension_semantics<parallel>], iteration_bounds = array<i64: 1>, scalar_prefetch = 0 : i64, scratch_operands = 0 : i64, tpu.core_type = #tpu.core_type<tc>, window_params = [{transform_indices = @transform_0, window_bounds = array<i64: 8, 128>}, {pipeline_mode = #tpu.pipeline_mode<synchronous>, transform_indices = @transform_1, window_bounds = array<i64: 8, 128, 128>}, {pipeline_mode = #tpu.pipeline_mode<synchronous>, transform_indices = @transform_2, window_bounds = array<i64: 8, 128>}, {transform_indices = @transform_3, window_bounds = array<i64: 8, 128>}]} {
    %c0 = arith.constant 0 : index
    %c0_0 = arith.constant 0 : index
    %0 = vector.load %arg1[%c0, %c0_0] : memref<8x128xf32, #tpu.memory_space<vmem>>, vector<8x128xf32>
    %1 = arith.truncf %0 : vector<8x128xf32> to vector<8x128xbf16>
    %c0_1 = arith.constant 0 : index
    %c0_2 = arith.constant 0 : index
    %c0_3 = arith.constant 0 : index
    %2 = vector.load %arg2[%c0_1, %c0_2, %c0_3] : memref<8x128x128xbf16, #tpu.memory_space<vmem>>, vector<1x128x128xbf16>
    %3 = vector.shape_cast %2 : vector<1x128x128xbf16> to vector<128x128xbf16>
    %cst = arith.constant dense<0.000000e+00> : vector<8x128xf32>
    %4 = tpu.matmul %1, %3, %cst {dimension_numbers = #tpu.dot_dimension_numbers<[1], [0], [0], [1], [0, 0, 1, 1], [], []>} : vector<8x128xbf16>, vector<128x128xbf16>, vector<8x128xf32> -> vector<8x128xf32>
    %c0_4 = arith.constant 0 : index
    %c0_5 = arith.constant 0 : index
    %5 = vector.load %arg3[%c0_4, %c0_5] : memref<8x128xf32, #tpu.memory_space<vmem>>, vector<1x128xf32>
    %6 = vector.broadcast %5 : vector<1x128xf32> to vector<8x128xf32>
    %7 = arith.addf %4, %6 : vector<8x128xf32>
    %cst_6 = arith.constant 0.000000e+00 : f32
    %8 = vector.broadcast %cst_6 : f32 to vector<8x128xf32>
    %9 = arith.maximumf %7, %8 : vector<8x128xf32>
    %10 = arith.truncf %9 : vector<8x128xf32> to vector<8x128xbf16>
    %c1 = arith.constant 1 : index
    %c0_7 = arith.constant 0 : index
    %c0_8 = arith.constant 0 : index
    %11 = vector.load %arg2[%c1, %c0_7, %c0_8] : memref<8x128x128xbf16, #tpu.memory_space<vmem>>, vector<1x128x128xbf16>
    %12 = vector.shape_cast %11 : vector<1x128x128xbf16> to vector<128x128xbf16>
    %cst_9 = arith.constant dense<0.000000e+00> : vector<8x128xf32>
    %13 = tpu.matmul %10, %12, %cst_9 {dimension_numbers = #tpu.dot_dimension_numbers<[1], [0], [0], [1], [0, 0, 1, 1], [], []>} : vector<8x128xbf16>, vector<128x128xbf16>, vector<8x128xf32> -> vector<8x128xf32>
    %c1_10 = arith.constant 1 : index
    %c0_11 = arith.constant 0 : index
    %14 = vector.load %arg3[%c1_10, %c0_11] : memref<8x128xf32, #tpu.memory_space<vmem>>, vector<1x128xf32>
    %15 = vector.broadcast %14 : vector<1x128xf32> to vector<8x128xf32>
    %16 = arith.addf %13, %15 : vector<8x128xf32>
    %cst_12 = arith.constant 0.000000e+00 : f32
    %17 = vector.broadcast %cst_12 : f32 to vector<8x128xf32>
    %18 = arith.maximumf %16, %17 : vector<8x128xf32>
    %19 = arith.truncf %18 : vector<8x128xf32> to vector<8x128xbf16>
    %c2 = arith.constant 2 : index
    %c0_13 = arith.constant 0 : index
    %c0_14 = arith.constant 0 : index
    %20 = vector.load %arg2[%c2, %c0_13, %c0_14] : memref<8x128x128xbf16, #tpu.memory_space<vmem>>, vector<1x128x128xbf16>
    %21 = vector.shape_cast %20 : vector<1x128x128xbf16> to vector<128x128xbf16>
    %cst_15 = arith.constant dense<0.000000e+00> : vector<8x128xf32>
    %22 = tpu.matmul %19, %21, %cst_15 {dimension_numbers = #tpu.dot_dimension_numbers<[1], [0], [0], [1], [0, 0, 1, 1], [], []>} : vector<8x128xbf16>, vector<128x128xbf16>, vector<8x128xf32> -> vector<8x128xf32>
    %c2_16 = arith.constant 2 : index
    %c0_17 = arith.constant 0 : index
    %23 = vector.load %arg3[%c2_16, %c0_17] : memref<8x128xf32, #tpu.memory_space<vmem>>, vector<1x128xf32>
    %24 = vector.broadcast %23 : vector<1x128xf32> to vector<8x128xf32>
    %25 = arith.addf %22, %24 : vector<8x128xf32>
    %cst_18 = arith.constant 0.000000e+00 : f32
    %26 = vector.broadcast %cst_18 : f32 to vector<8x128xf32>
    %27 = arith.maximumf %25, %26 : vector<8x128xf32>
    %28 = arith.truncf %27 : vector<8x128xf32> to vector<8x128xbf16>
    %c3 = arith.constant 3 : index
    %c0_19 = arith.constant 0 : index
    %c0_20 = arith.constant 0 : index
    %29 = vector.load %arg2[%c3, %c0_19, %c0_20] : memref<8x128x128xbf16, #tpu.memory_space<vmem>>, vector<1x128x128xbf16>
    %30 = vector.shape_cast %29 : vector<1x128x128xbf16> to vector<128x128xbf16>
    %cst_21 = arith.constant dense<0.000000e+00> : vector<8x128xf32>
    %31 = tpu.matmul %28, %30, %cst_21 {dimension_numbers = #tpu.dot_dimension_numbers<[1], [0], [0], [1], [0, 0, 1, 1], [], []>} : vector<8x128xbf16>, vector<128x128xbf16>, vector<8x128xf32> -> vector<8x128xf32>
    %c3_22 = arith.constant 3 : index
    %c0_23 = arith.constant 0 : index
    %32 = vector.load %arg3[%c3_22, %c0_23] : memref<8x128xf32, #tpu.memory_space<vmem>>, vector<1x128xf32>
    %33 = vector.broadcast %32 : vector<1x128xf32> to vector<8x128xf32>
    %34 = arith.addf %31, %33 : vector<8x128xf32>
    %cst_24 = arith.constant 0.000000e+00 : f32
    %35 = vector.broadcast %cst_24 : f32 to vector<8x128xf32>
    %36 = arith.maximumf %34, %35 : vector<8x128xf32>
    %37 = arith.truncf %36 : vector<8x128xf32> to vector<8x128xbf16>
    %c4 = arith.constant 4 : index
    %c0_25 = arith.constant 0 : index
    %c0_26 = arith.constant 0 : index
    %38 = vector.load %arg2[%c4, %c0_25, %c0_26] : memref<8x128x128xbf16, #tpu.memory_space<vmem>>, vector<1x128x128xbf16>
    %39 = vector.shape_cast %38 : vector<1x128x128xbf16> to vector<128x128xbf16>
    %cst_27 = arith.constant dense<0.000000e+00> : vector<8x128xf32>
    %40 = tpu.matmul %37, %39, %cst_27 {dimension_numbers = #tpu.dot_dimension_numbers<[1], [0], [0], [1], [0, 0, 1, 1], [], []>} : vector<8x128xbf16>, vector<128x128xbf16>, vector<8x128xf32> -> vector<8x128xf32>
    %c4_28 = arith.constant 4 : index
    %c0_29 = arith.constant 0 : index
    %41 = vector.load %arg3[%c4_28, %c0_29] : memref<8x128xf32, #tpu.memory_space<vmem>>, vector<1x128xf32>
    %42 = vector.broadcast %41 : vector<1x128xf32> to vector<8x128xf32>
    %43 = arith.addf %40, %42 : vector<8x128xf32>
    %cst_30 = arith.constant 0.000000e+00 : f32
    %44 = vector.broadcast %cst_30 : f32 to vector<8x128xf32>
    %45 = arith.maximumf %43, %44 : vector<8x128xf32>
    %46 = arith.truncf %45 : vector<8x128xf32> to vector<8x128xbf16>
    %c5 = arith.constant 5 : index
    %c0_31 = arith.constant 0 : index
    %c0_32 = arith.constant 0 : index
    %47 = vector.load %arg2[%c5, %c0_31, %c0_32] : memref<8x128x128xbf16, #tpu.memory_space<vmem>>, vector<1x128x128xbf16>
    %48 = vector.shape_cast %47 : vector<1x128x128xbf16> to vector<128x128xbf16>
    %cst_33 = arith.constant dense<0.000000e+00> : vector<8x128xf32>
    %49 = tpu.matmul %46, %48, %cst_33 {dimension_numbers = #tpu.dot_dimension_numbers<[1], [0], [0], [1], [0, 0, 1, 1], [], []>} : vector<8x128xbf16>, vector<128x128xbf16>, vector<8x128xf32> -> vector<8x128xf32>
    %c5_34 = arith.constant 5 : index
    %c0_35 = arith.constant 0 : index
    %50 = vector.load %arg3[%c5_34, %c0_35] : memref<8x128xf32, #tpu.memory_space<vmem>>, vector<1x128xf32>
    %51 = vector.broadcast %50 : vector<1x128xf32> to vector<8x128xf32>
    %52 = arith.addf %49, %51 : vector<8x128xf32>
    %cst_36 = arith.constant 0.000000e+00 : f32
    %53 = vector.broadcast %cst_36 : f32 to vector<8x128xf32>
    %54 = arith.maximumf %52, %53 : vector<8x128xf32>
    %55 = arith.truncf %54 : vector<8x128xf32> to vector<8x128xbf16>
    %c6 = arith.constant 6 : index
    %c0_37 = arith.constant 0 : index
    %c0_38 = arith.constant 0 : index
    %56 = vector.load %arg2[%c6, %c0_37, %c0_38] : memref<8x128x128xbf16, #tpu.memory_space<vmem>>, vector<1x128x128xbf16>
    %57 = vector.shape_cast %56 : vector<1x128x128xbf16> to vector<128x128xbf16>
    %cst_39 = arith.constant dense<0.000000e+00> : vector<8x128xf32>
    %58 = tpu.matmul %55, %57, %cst_39 {dimension_numbers = #tpu.dot_dimension_numbers<[1], [0], [0], [1], [0, 0, 1, 1], [], []>} : vector<8x128xbf16>, vector<128x128xbf16>, vector<8x128xf32> -> vector<8x128xf32>
    %c6_40 = arith.constant 6 : index
    %c0_41 = arith.constant 0 : index
    %59 = vector.load %arg3[%c6_40, %c0_41] : memref<8x128xf32, #tpu.memory_space<vmem>>, vector<1x128xf32>
    %60 = vector.broadcast %59 : vector<1x128xf32> to vector<8x128xf32>
    %61 = arith.addf %58, %60 : vector<8x128xf32>
    %cst_42 = arith.constant 0.000000e+00 : f32
    %62 = vector.broadcast %cst_42 : f32 to vector<8x128xf32>
    %63 = arith.maximumf %61, %62 : vector<8x128xf32>
    %64 = arith.truncf %63 : vector<8x128xf32> to vector<8x128xbf16>
    %c7 = arith.constant 7 : index
    %c0_43 = arith.constant 0 : index
    %c0_44 = arith.constant 0 : index
    %65 = vector.load %arg2[%c7, %c0_43, %c0_44] : memref<8x128x128xbf16, #tpu.memory_space<vmem>>, vector<1x128x128xbf16>
    %66 = vector.shape_cast %65 : vector<1x128x128xbf16> to vector<128x128xbf16>
    %cst_45 = arith.constant dense<0.000000e+00> : vector<8x128xf32>
    %67 = tpu.matmul %64, %66, %cst_45 {dimension_numbers = #tpu.dot_dimension_numbers<[1], [0], [0], [1], [0, 0, 1, 1], [], []>} : vector<8x128xbf16>, vector<128x128xbf16>, vector<8x128xf32> -> vector<8x128xf32>
    %c7_46 = arith.constant 7 : index
    %c0_47 = arith.constant 0 : index
    %68 = vector.load %arg3[%c7_46, %c0_47] : memref<8x128xf32, #tpu.memory_space<vmem>>, vector<1x128xf32>
    %69 = vector.broadcast %68 : vector<1x128xf32> to vector<8x128xf32>
    %70 = arith.addf %67, %69 : vector<8x128xf32>
    %71 = arith.negf %70 : vector<8x128xf32>
    %72 = math.exp %71 : vector<8x128xf32>
    %cst_48 = arith.constant 1.000000e+00 : f32
    %73 = vector.broadcast %cst_48 : f32 to vector<8x128xf32>
    %74 = arith.addf %73, %72 : vector<8x128xf32>
    %75 = arith.divf %73, %74 : vector<8x128xf32>
    %c0_49 = arith.constant 0 : index
    %c0_50 = arith.constant 0 : index
    %76 = vector.load %arg4[%c0_49, %c0_50] : memref<8x128xf32, #tpu.memory_space<vmem>>, vector<8x128xf32>
    tpu.vector_store %arg4[%c0_49, %c0_50], %75 {strides = array<i32>} : memref<8x128xf32, #tpu.memory_space<vmem>>, vector<8x128xf32>,
    return
  }
  func.func @transform_0(%arg0: i32) -> (i32, i32) {
    %c0_i32 = arith.constant 0 : i32
    %c0_i32_0 = arith.constant 0 : i32
    return %arg0, %c0_i32 : i32, i32
  }
  func.func @transform_1(%arg0: i32) -> (i32, i32, i32) {
    %c0_i32 = arith.constant 0 : i32
    %c0_i32_0 = arith.constant 0 : i32
    %c0_i32_1 = arith.constant 0 : i32
    %c0_i32_2 = arith.constant 0 : i32
    return %c0_i32, %c0_i32_0, %c0_i32_1 : i32, i32, i32
  }
  func.func @transform_2(%arg0: i32) -> (i32, i32) {
    %c0_i32 = arith.constant 0 : i32
    %c0_i32_0 = arith.constant 0 : i32
    %c0_i32_1 = arith.constant 0 : i32
    return %c0_i32, %c0_i32_0 : i32, i32
  }
  func.func @transform_3(%arg0: i32) -> (i32, i32) {
    %c0_i32 = arith.constant 0 : i32
    %c0_i32_0 = arith.constant 0 : i32
    return %arg0, %c0_i32 : i32, i32
  }
}

</mosaic_0001>

<bundles_post_ra>
// kernel: autoencoder_forward.1
= control target key start
LH: loop header
LB: loop body
LE: loop exit
PB: predicated region body
PF: predicated region fallthrough
CT: control target
= control target key end

     0   :  { %8 = vsyncpa [#allocation3], 0  ;;  %s1169_s0 = inlined_call_operand.vmem [shape: f32[8,128], index: 0, kind: input, shape index: {}]   ;;  %s1170_s1 = inlined_call_operand.hbm [shape: bf16[8,128,128], index: 1, kind: input, shape index: {}]   ;;  %s1171_s2 = inlined_call_operand.vmem [shape: f32[8,128], index: 2, kind: input, shape index: {}]   ;;  %s1172_s3 = inlined_call_operand.hbm [shape: f32[8,128], index: 3, kind: output, shape index: {}]  }
   0x1   :  { %9 = vsyncpa [#allocation4], 0  ;;  %s16_s14 = sshll.u32 %s1170_s1, 4  ;;  %s1112_s15 = smov [#allocation2]   ;;  %s17_s14 = int_to_ptr.hbm [resolvable:$true] %s16_s14 }
   0x2   :  { %s18_s16 = sshll.u32 %s1112_s15, 4  ;;  %s1113_s17 = smov 64   ;;  %s19_s16 = int_to_ptr.vmem [resolvable:$true] %s18_s16 }
   0x3   :  { %s1114_s18 = smov 4  }
   0x4   :  { %24 = dma.hbm_to_vmem [thread:$0]  %s17_s14, 8192, %s19_s16, [#allocation3], %s1113_s17, %s1113_s17, %s1114_s18  }
   0x5   :  { %1108 = dma.done.wait [#allocation3], 8192  }
   0x6   :  { %1109 = vsyncadd [#allocation3], 4294959104  ;;  %v987_v0 = vld [vmem:[#allocation2 + $0x38] sm:$0xff]  ;;  %v986_v1 = vld [vmem:[#allocation2 + $0x30] sm:$0xff]  ;;  %s1115_s8 = smov [#allocation5]  }
   0x7   :  { %99 = vmatpush.bf16.msra.mxu0 %v987_v0  ;;  %v995_v2 = vld [vmem:[#allocation2 + $0x78] sm:$0xff]  ;;  %v985_v3 = vld [vmem:[#allocation2 + $0x28] sm:$0xff]  ;;  %v994_v4 = vld [vmem:[#allocation2 + $0x70] sm:$0xff]  ;;  %s711_s9 = sshll.u32 %s1115_s8, 4  ;;  %s712_s9 = int_to_ptr.vmem [resolvable:$true] %s711_s9 }
   0x8   :  { %181 = vmatpush.bf16.msra.mxu1 %v995_v2  ;;  %v993_v5 = vld [vmem:[#allocation2 + $0x68] sm:$0xff]  ;;  %v984_v6 = vld [vmem:[#allocation2 + $0x20] sm:$0xff]  ;;  %v983_v8 = vld [vmem:[#allocation2 + $0x18] sm:$0xff] }
   0x9   :  { %v992_v7 = vld [vmem:[#allocation2 + $0x60] sm:$0xff]  ;;  %v991_v9 = vld [vmem:[#allocation2 + $0x58] sm:$0xff]  ;;  %v982_v10 = vld [vmem:[#allocation2 + $0x10] sm:$0xff] }
   0xa   :  { %v990_v11 = vld [vmem:[#allocation2 + $0x50] sm:$0xff]  ;;  %v981_v12 = vld [vmem:[#allocation2 + $0x8] sm:$0xff]  ;;  %v980_v13 = vld [vmem:[#allocation2] sm:$0xff] }
   0xb   :  { %100 = vmatpush.bf16.msra.mxu0 %v986_v1  ;;  %v31_v14 = vld [vmem:[%s1169_s0] sm:$0xff]  ;;  %v989_v16 = vld [vmem:[#allocation2 + $0x48] sm:$0xff]  ;;  %v1003_v18 = vld [vmem:[#allocation2 + $0xb8] sm:$0xff] }
   0xc   :  { %182 = vmatpush.bf16.msra.mxu1 %v994_v4  ;;  %v32_v15 = vpack.c.bf16 %v31_v14, %v31_v14  ;;  %v988_v17 = vld [vmem:[#allocation2 + $0x40] sm:$0xff]  ;;  %263 = vmatpush.bf16.msra.mxu2 %v1003_v18  ;;  %v1002_v19 = vld [vmem:[#allocation2 + $0xb0] sm:$0xff]  ;;  %v1001_v20 = vld [vmem:[#allocation2 + $0xa8] sm:$0xff] }
   0xd   :  { %v1000_v21 = vld [vmem:[#allocation2 + $0xa0] sm:$0xff]  ;;  %v999_v22 = vld [vmem:[#allocation2 + $0x98] sm:$0xff]  ;;  %v998_v23 = vld [vmem:[#allocation2 + $0x90] sm:$0xff] }
   0xe   :  { %v1048_v24 = vld [vmem:[%s1171_s2] ss:$0 sm:$0xff]  ;;  %v997_v30 = vld [vmem:[#allocation2 + $0x88] sm:$0xff]  ;;  %v1011_v32 = vld [vmem:[#allocation2 + $0xf8] sm:$0xff] }
   0xf   :  { %101 = vmatpush.bf16.msra.mxu0 %v985_v3  ;;  %v996_v31 = vld [vmem:[#allocation2 + $0x80] sm:$0xff]  ;;  %345 = vmatpush.bf16.msra.mxu3 %v1011_v32  ;;  %v1010_v33 = vld [vmem:[#allocation2 + $0xf0] sm:$0xff]  ;;  %v1009_v34 = vld [vmem:[#allocation2 + $0xe8] sm:$0xff] }
  0x10   :  { %183 = vmatpush.bf16.msra.mxu1 %v993_v5  ;;  %264 = vmatpush.bf16.msra.mxu2 %v1002_v19  ;;  %v1008_v35 = vld [vmem:[#allocation2 + $0xe0] sm:$0xff]  ;;  %v1007_v36 = vld [vmem:[#allocation2 + $0xd8] sm:$0xff]  ;;  %v1006_v37 = vld [vmem:[#allocation2 + $0xd0] sm:$0xff] }
  0x11   :  { %v1049_v38 = vld [vmem:[%s1171_s2 + $0x1] ss:$0 sm:$0xff]  ;;  %v1005_v44 = vld [vmem:[#allocation2 + $0xc8] sm:$0xff]  ;;  %v1019_v46 = vld [vmem:[#allocation2 + $0x138] sm:$0xff] }
  0x12   :  { %v1004_v45 = vld [vmem:[#allocation2 + $0xc0] sm:$0xff]  ;;  %v1018_v47 = vld [vmem:[#allocation2 + $0x130] sm:$0xff]  ;;  %v1017_v48 = vld [vmem:[#allocation2 + $0x128] sm:$0xff] }
  0x13   :  { %102 = vmatpush.bf16.msra.mxu0 %v984_v6  ;;  %346 = vmatpush.bf16.msra.mxu3 %v1010_v33  ;;  %v1016_v49 = vld [vmem:[#allocation2 + $0x120] sm:$0xff]  ;;  %v1015_v50 = vld [vmem:[#allocation2 + $0x118] sm:$0xff]  ;;  %v1014_v51 = vld [vmem:[#allocation2 + $0x110] sm:$0xff] }
  0x14   :  { %184 = vmatpush.bf16.msra.mxu1 %v992_v7  ;;  %265 = vmatpush.bf16.msra.mxu2 %v1001_v20  ;;  %v1050_v52 = vld [vmem:[%s1171_s2 + $0x2] ss:$0 sm:$0xff]  ;;  %v1013_v58 = vld [vmem:[#allocation2 + $0x108] sm:$0xff]  ;;  %v1027_v60 = vld [vmem:[#allocation2 + $0x178] sm:$0xff] }
  0x15   :  { %v1012_v59 = vld [vmem:[#allocation2 + $0x100] sm:$0xff]  ;;  %v1026_v61 = vld [vmem:[#allocation2 + $0x170] sm:$0xff]  ;;  %v1025_v62 = vld [vmem:[#allocation2 + $0x168] sm:$0xff] }
  0x16   :  { %v1024_v63 = vld [vmem:[#allocation2 + $0x160] sm:$0xff]  ;;  %v1023_v0 = vld [vmem:[#allocation2 + $0x158] sm:$0xff]  ;;  %v1022_v1 = vld [vmem:[#allocation2 + $0x150] sm:$0xff] }
  0x17   :  { %103 = vmatpush.bf16.msra.mxu0 %v983_v8  ;;  %347 = vmatpush.bf16.msra.mxu3 %v1009_v34  ;;  %v1051_v2 = vld [vmem:[%s1171_s2 + $0x3] ss:$0 sm:$0xff]  ;;  %v1021_v8 = vld [vmem:[#allocation2 + $0x148] sm:$0xff]  ;;  %v1031_v14 = vld [vmem:[#allocation2 + $0x198] sm:$0xff] }
  0x18   :  { %185 = vmatpush.bf16.msra.mxu1 %v991_v9  ;;  %266 = vmatpush.bf16.msra.mxu2 %v1000_v21  ;;  %v1020_v9 = vld [vmem:[#allocation2 + $0x140] sm:$0xff] }
  0x1b   :  { %104 = vmatpush.bf16.msra.mxu0 %v982_v10  ;;  %348 = vmatpush.bf16.msra.mxu3 %v1008_v35  ;;  %v1035_v10 = vld [vmem:[#allocation2 + $0x1b8] sm:$0xff] }
  0x1c   :  { %186 = vmatpush.bf16.msra.mxu1 %v990_v11  ;;  %267 = vmatpush.bf16.msra.mxu2 %v999_v22  ;;  %v1034_v11 = vld [vmem:[#allocation2 + $0x1b0] sm:$0xff]  ;;  %v1029_v22 = vld [vmem:[#allocation2 + $0x188] sm:$0xff] }
  0x1f   :  { %105 = vmatpush.bf16.msra.mxu0 %v981_v12  ;;  %349 = vmatpush.bf16.msra.mxu3 %v1007_v36  ;;  %v1033_v12 = vld [vmem:[#allocation2 + $0x1a8] sm:$0xff] }
  0x20   :  { %187 = vmatpush.bf16.msra.mxu1 %v989_v16  ;;  %268 = vmatpush.bf16.msra.mxu2 %v998_v23  ;;  %v1052_v16 = vld [vmem:[%s1171_s2 + $0x4] ss:$0 sm:$0xff]  ;;  %v1037_v36 = vld [vmem:[#allocation2 + $0x1c8] sm:$0xff] }
  0x21   :  { %v1028_v23 = vld [vmem:[#allocation2 + $0x180] sm:$0xff] }
  0x23   :  { %106 = vmatpush.bf16.msra.mxu0 %v980_v13  ;;  %350 = vmatpush.bf16.msra.mxu3 %v1006_v37  ;;  %v1032_v13 = vld [vmem:[#allocation2 + $0x1a0] sm:$0xff] }
  0x24   :  { %188 = vmatpush.bf16.msra.mxu1 %v988_v17  ;;  %269 = vmatpush.bf16.msra.mxu2 %v997_v30  ;;  %v1053_v30 = vld [vmem:[%s1171_s2 + $0x5] ss:$0 sm:$0xff] }
  0x25   :  { %v1036_v37 = vld [vmem:[#allocation2 + $0x1c0] sm:$0xff] }
  0x26   :  { %107 = vmatmul.bf16.vlgmr.msra.gmra.mxu0 %v32_v15  ;;  %v1030_v15 = vld [vmem:[#allocation2 + $0x190] sm:$0xff] }
  0x27   :  { %351 = vmatpush.bf16.msra.mxu3 %v1005_v44  ;;  %427 = vmatpush.bf16.msrb.mxu0 %v1019_v46  ;;  %v1055_v44 = vld [vmem:[%s1171_s2 + $0x7] ss:$0 sm:$0xff] }
  0x28   :  { %270 = vmatpush.bf16.msra.mxu2 %v996_v31  ;;  %509 = vmatpush.bf16.msrb.mxu1 %v1027_v60 }
  0x2b   :  { %352 = vmatpush.bf16.msra.mxu3 %v1004_v45  ;;  %428 = vmatpush.bf16.msrb.mxu0 %v1018_v47 }
  0x2c   :  { %510 = vmatpush.bf16.msrb.mxu1 %v1026_v61  ;;  %591 = vmatpush.bf16.msrb.mxu2 %v1035_v10 }
  0x2f   :  { %429 = vmatpush.bf16.msrb.mxu0 %v1017_v48 }
  0x30   :  { %511 = vmatpush.bf16.msrb.mxu1 %v1025_v62  ;;  %592 = vmatpush.bf16.msrb.mxu2 %v1034_v11 }
  0x33   :  { %430 = vmatpush.bf16.msrb.mxu0 %v1016_v49 }
  0x34   :  { %512 = vmatpush.bf16.msrb.mxu1 %v1024_v63  ;;  %593 = vmatpush.bf16.msrb.mxu2 %v1033_v12 }
  0x37   :  { %431 = vmatpush.bf16.msrb.mxu0 %v1015_v50 }
  0x38   :  { %513 = vmatpush.bf16.msrb.mxu1 %v1023_v0  ;;  %594 = vmatpush.bf16.msrb.mxu2 %v1032_v13 }
  0x3b   :  { %432 = vmatpush.bf16.msrb.mxu0 %v1014_v51 }
  0x3c   :  { %514 = vmatpush.bf16.msrb.mxu1 %v1022_v1  ;;  %595 = vmatpush.bf16.msrb.mxu2 %v1031_v14 }
  0x3f   :  { %433 = vmatpush.bf16.msrb.mxu0 %v1013_v58 }
  0x40   :  { %515 = vmatpush.bf16.msrb.mxu1 %v1021_v8  ;;  %596 = vmatpush.bf16.msrb.mxu2 %v1030_v15 }
  0x43   :  { %434 = vmatpush.bf16.msrb.mxu0 %v1012_v59 }
  0x44   :  { %516 = vmatpush.bf16.msrb.mxu1 %v1020_v9  ;;  %597 = vmatpush.bf16.msrb.mxu2 %v1029_v22 }
  0x48   :  { %598 = vmatpush.bf16.msrb.mxu2 %v1028_v23 }
  0xa3   :  { %v108_v25 = vpop.f32.mrf.mxu0 }
  0xa4   :  { %v109_v26 = vadd.f32 %v1048_v24, %v108_v25  ;;  %v1043_v24 = vld [vmem:[#allocation2 + $0x1f8] sm:$0xff]  ;;  %v1042_v25 = vld [vmem:[#allocation2 + $0x1f0] sm:$0xff] }
  0xa5   :  { %673 = vmatpush.bf16.msrb.mxu3 %v1043_v24 }
  0xa6   :  { %v112_v27 = vmax.f32 %v109_v26, 0.0  ;;  %v1041_v26 = vld [vmem:[#allocation2 + $0x1e8] sm:$0xff] }
  0xa8   :  { %v113_v28 = vpack.c.bf16 %v112_v27, %v112_v27  ;;  %v1040_v27 = vld [vmem:[#allocation2 + $0x1e0] sm:$0xff] }
  0xa9   :  { %674 = vmatpush.bf16.msrb.mxu3 %v1042_v25 }
  0xaa   :  { %189 = vmatmul.bf16.vlgmr.msra.gmra.mxu1 %v113_v28  ;;  %v1039_v28 = vld [vmem:[#allocation2 + $0x1d8] sm:$0xff] }
  0xab   :  { %v110_v29 = vpop.f32.mrf.mxu0 }
  0xac   :  { %v1038_v29 = vld [vmem:[#allocation2 + $0x1d0] sm:$0xff] }
  0xad   :  { %675 = vmatpush.bf16.msrb.mxu3 %v1041_v26 }
  0xb1   :  { %676 = vmatpush.bf16.msrb.mxu3 %v1040_v27 }
  0xb5   :  { %677 = vmatpush.bf16.msrb.mxu3 %v1039_v28 }
  0xb9   :  { %678 = vmatpush.bf16.msrb.mxu3 %v1038_v29 }
  0xbd   :  { %679 = vmatpush.bf16.msrb.mxu3 %v1037_v36 }
  0xc1   :  { %680 = vmatpush.bf16.msrb.mxu3 %v1036_v37 }
 0x127   :  { %v190_v39 = vpop.f32.mrf.mxu1 }
 0x128   :  { %v191_v40 = vadd.f32 %v1049_v38, %v190_v39  ;;  %v1054_v38 = vld [vmem:[%s1171_s2 + $0x6] ss:$0 sm:$0xff]  ;;  %s713_s2 = sshll.u32 %s1172_s3, 4  ;;  %s714_s2 = int_to_ptr.hbm [resolvable:$true] %s713_s2 }
 0x12a   :  { %v194_v41 = vmax.f32 %v191_v40, 0.0 }
 0x12c   :  { %v195_v42 = vpack.c.bf16 %v194_v41, %v194_v41 }
 0x12e   :  { %271 = vmatmul.bf16.vlgmr.msra.gmra.mxu2 %v195_v42 }
 0x12f   :  { %v192_v43 = vpop.f32.mrf.mxu1 }
 0x1b1   :  { %v272_v53 = vpop.f32.mrf.mxu2 }
 0x1b2   :  { %v273_v54 = vadd.f32 %v1050_v52, %v272_v53 }
 0x1b4   :  { %v276_v55 = vmax.f32 %v273_v54, 0.0 }
 0x1b6   :  { %v277_v56 = vpack.c.bf16 %v276_v55, %v276_v55 }
 0x1b8   :  { %353 = vmatmul.bf16.vlgmr.msra.gmra.mxu3 %v277_v56 }
 0x1b9   :  { %v274_v57 = vpop.f32.mrf.mxu2 }
 0x23b   :  { %v354_v3 = vpop.f32.mrf.mxu3 }
 0x23c   :  { %v355_v4 = vadd.f32 %v1051_v2, %v354_v3 }
 0x23e   :  { %v358_v5 = vmax.f32 %v355_v4, 0.0 }
 0x240   :  { %v359_v6 = vpack.c.bf16 %v358_v5, %v358_v5 }
 0x242   :  { %435 = vmatmul.bf16.vlgmr.msrb.gmra.mxu0 %v359_v6 }
 0x243   :  { %v356_v7 = vpop.f32.mrf.mxu3 }
 0x2bf   :  { %v436_v17 = vpop.f32.mrf.mxu0 }
 0x2c0   :  { %v437_v18 = vadd.f32 %v1052_v16, %v436_v17 }
 0x2c2   :  { %v440_v19 = vmax.f32 %v437_v18, 0.0 }
 0x2c4   :  { %v441_v20 = vpack.c.bf16 %v440_v19, %v440_v19 }
 0x2c6   :  { %517 = vmatmul.bf16.vlgmr.msrb.gmra.mxu1 %v441_v20 }
 0x2c7   :  { %v438_v21 = vpop.f32.mrf.mxu0 }
 0x343   :  { %v518_v31 = vpop.f32.mrf.mxu1 }
 0x344   :  { %v519_v32 = vadd.f32 %v1053_v30, %v518_v31 }
 0x346   :  { %v522_v33 = vmax.f32 %v519_v32, 0.0 }
 0x348   :  { %v523_v34 = vpack.c.bf16 %v522_v33, %v522_v33 }
 0x34a   :  { %599 = vmatmul.bf16.vlgmr.msrb.gmra.mxu2 %v523_v34 }
 0x34b   :  { %v520_v35 = vpop.f32.mrf.mxu1 }
 0x3cd   :  { %v600_v39 = vpop.f32.mrf.mxu2 }
 0x3ce   :  { %v601_v40 = vadd.f32 %v1054_v38, %v600_v39 }
 0x3d0   :  { %v604_v41 = vmax.f32 %v601_v40, 0.0 }
 0x3d2   :  { %v605_v42 = vpack.c.bf16 %v604_v41, %v604_v41 }
 0x3d4   :  { %681 = vmatmul.bf16.vlgmr.msrb.gmra.mxu3 %v605_v42 }
 0x3d5   :  { %v602_v43 = vpop.f32.mrf.mxu2 }
 0x457   :  { %v682_v45 = vpop.f32.mrf.mxu3 }
 0x458   :  { %v683_v46 = vadd.f32 %v1055_v44, %v682_v45 }
 0x45a   :  { %v979_v47 = vmul.f32 -1.442695, %v683_v46 }
 0x45c   :  { %1056 = vpow2.f32 %v979_v47 }
 0x45f   :  { %v684_v48 = vpop.f32.mrf.mxu3 }
 0x462   :  { %v1057_v49 = vpop.eup %1056 }
 0x463   :  { %v689_v50 = vadd.f32 1.0, %v1057_v49 }
 0x465   :  { %1058 = vrcp.f32 %v689_v50  ;;  %v701_v54 = vand.u32 2147483648, %v689_v50  ;;  %v699_v56 = vand.u32 2147483647, %v689_v50  ;;  %vm695_vm1 = vweird.f32 %v689_v50 }
 0x467   :  { %v702_v58 = vor.u32 1.1754944e-38, %v701_v54  ;;  %vm700_vm3 = vcmp.eq.f32.partialorder %v699_v56, 8.507059e+37 }
 0x46b   :  { %v1059_v51 = vpop.eup %1058 }
 0x46c   :  { %v691_v52 = vmul.f32 %v1059_v51, %v689_v50  ;;  %vm696_vm0 = vweird.f32 %v1059_v51 }
 0x46d   :  { %vm697_vm2 = vmor %vm695_vm1, %vm696_vm0 }
 0x46e   :  { %v692_v53 = vsub.f32 1.0, %v691_v52 }
 0x470   :  { %v693_v55 = vmul.f32 %v1059_v51, %v692_v53 }
 0x472   :  { %v694_v57 = vadd.f32 %v1059_v51, %v693_v55 }
 0x474   :  { %v698_v59 = vsel %vm697_vm2, %v1059_v51, %v694_v57 }
 0x475   :  { %v703_v60 = vsel %vm700_vm3, %v702_v58, %v698_v59 }
 0x476   :  { %705 = vst [vmem:[#allocation5] sm:$0xff] %v703_v60 }
 0x477   :  { %716 = dma.vmem_to_hbm [thread:$0]  %s712_s9, 128, %s714_s2, [#allocation4]  }
 0x478   :  { %1110 = dma.done.wait [#allocation4], 128  }
 0x479   :  { %1111 = vsyncadd [#allocation4], 4294967168 }
 0x47a   :  { %721 = vsyncpa [#allocation3], 1 }
 0x47b   :  { %722 = vsyncpa [#allocation4], 1 }

</bundles_post_ra>
